<compile_context>
chip_gen: v7x
topology: tpu7x:2x2x1
jax: 0.10.0
libtpu: 0.0.40
codegen_flags: <defaults>
</compile_context>

<pallas_src>
import functools

import jax
import jax.numpy as jnp
from jax.experimental import pallas as pl
from jax.experimental.pallas import tpu as pltpu


def _unpixel_shuffle_kernel(x_ref, o_ref, *, r):
    # x_ref: (cb, H, W) input slab; o_ref: (cb, r*r, Ho, Wo) output slab.
    cb, H, W = x_ref.shape
    Ho, Wo = H // r, W // r
    dt = x_ref.dtype
    one = jnp.array(1, dtype=dt)
    zero = jnp.array(0, dtype=dt)

    # Per-dj 0/1 lane selectors R_dj: (W, Wo) with R_dj[w*r + dj, w] = 1.
    # Built once per grid step from iota (integer mul/eq only, no div/mod,
    # no selector HBM traffic).
    src = jax.lax.broadcasted_iota(jnp.int32, (W, Wo), 0)
    dst = jax.lax.broadcasted_iota(jnp.int32, (W, Wo), 1)
    Rs = [jnp.where(src == dst * r + dj, one, zero) for dj in range(r)]

    # A 0/1 selector matmul produces exactly one term per output element, so
    # accumulating in the input dtype is exact for f32/bf16 (no cast chain).
    acc_dt = dt if dt in (jnp.float32, jnp.bfloat16) else jnp.float32

    for di in range(r):
        # H gather: strided sublane read (replaces the old row-selector matmul).
        rows = x_ref[:, pl.ds(di, Ho, stride=r), :]            # (cb, Ho, W)
        rows2 = rows.reshape(cb * Ho, W)                       # channels -> M
        for dj in range(r):
            # W gather: one MXU matmul for the whole channel batch; the result
            # is directly the storeable (cb, Ho, Wo) tile for output plane
            # k = di*r + dj (no lane-crossing slicing).
            y = jnp.dot(rows2, Rs[dj], preferred_element_type=acc_dt).astype(dt)
            o_ref[:, di * r + dj] = y.reshape(cb, Ho, Wo)


def _vmem_capacity_bytes():
    try:
        return int(pltpu.get_tpu_info().vmem_capacity_bytes)
    except Exception:
        return 64 << 20          # conservative (v7x-sized) default


def _pick_cb(nc, bytes_per_image, target_bytes):
    """Channel batch per grid step: ~target_bytes blocks, >=2 (even) grid steps."""
    cap = min(nc, max(1, target_bytes // max(1, bytes_per_image)))
    best_div = max(d for d in range(1, cap + 1) if nc % d == 0)
    # Prefer an exact divisor; if none is close to the cap (prime/odd N*C), use
    # a non-divisor block and let Pallas pad/mask the last block instead of
    # collapsing to cb=1 (tiny-block regime).
    cb = best_div if 2 * best_div >= cap else cap
    steps = pl.cdiv(nc, cb)
    if nc > 1 and steps < 2:                 # >=2 steps so both v7x TCs get work
        cb = pl.cdiv(nc, 2)
        steps = pl.cdiv(nc, cb)
    if steps > 1 and steps % 2 == 1:         # prefer an even step count (2 TCs)
        cb2 = max(1, pl.cdiv(nc, steps + 1))
        if pl.cdiv(nc, cb2) % 2 == 0:
            cb = cb2
    return cb


def _reference(x, r):
    # Pure-JAX reference (reshape + transpose), equivalent to the torch module.
    N, C, H, W = x.shape
    x6 = x.reshape(N, C, H // r, r, W // r, r)
    return jnp.transpose(x6, (0, 1, 3, 5, 2, 4)).reshape(N, C * r * r, H // r, W // r)


def unpixel_shuffle(x, downscale_factor):
    r = int(downscale_factor)
    N, C, H, W = x.shape
    assert H % r == 0 and W % r == 0, "H and W must be divisible by downscale_factor"
    if r == 1:
        return x
    Ho, Wo = H // r, W // r

    if not jnp.issubdtype(x.dtype, jnp.floating):
        # TODO(synk): add a strided-DMA integer path; v7x's MXU is fp8-only, so
        # the 0/1 selector matmul is float-only.  Fall back to XLA for int/bool.
        return _reference(x, r)

    NC = N * C
    itemsize = jnp.dtype(x.dtype).itemsize
    vmem_cap = _vmem_capacity_bytes()
    # Bigger blocks on 128 MiB parts (v5e/v6e) amortize the ~0.35us/step
    # overhead and make bigger DMAs; keep ~2 MiB blocks on v7x (64 MiB VMEM).
    target_bytes = (8 << 20) if vmem_cap >= (96 << 20) else (2 << 20)
    cb = _pick_cb(NC, H * W * itemsize, target_bytes)
    num_blocks = pl.cdiv(NC, cb)

    # VMEM budget: double-buffered in+out blocks, selectors, dtype-sized
    # intermediates, plus margin; clamped well below physical capacity.
    block_bytes = cb * H * W * itemsize
    sel_bytes = r * W * Wo * itemsize
    interm_bytes = 2 * cb * Ho * (W + 2 * Wo) * itemsize
    vmem_limit = int(min(max(4 * block_bytes + sel_bytes + interm_bytes + (4 << 20),
                             32 << 20),
                         (vmem_cap * 7) // 8))

    x_nc = x.reshape(NC, H, W)                     # free metadata reshape
    kernel = functools.partial(_unpixel_shuffle_kernel, r=r)

    # Memory-bound permutation; only the lane-gather matmuls remain as flops.
    cost = pl.CostEstimate(
        flops=2 * NC * H * W * W,
        transcendentals=0,
        bytes_accessed=2 * NC * H * W * itemsize)

    out = pl.pallas_call(
        kernel,
        out_shape=jax.ShapeDtypeStruct((NC, r * r, Ho, Wo), x.dtype),
        grid=(num_blocks,),
        in_specs=[pl.BlockSpec((cb, H, W), lambda i: (i, 0, 0))],
        out_specs=pl.BlockSpec((cb, r * r, Ho, Wo), lambda i: (i, 0, 0, 0)),
        compiler_params=pltpu.CompilerParams(
            dimension_semantics=("parallel",),
            vmem_limit_bytes=vmem_limit),
        cost_estimate=cost,
    )(x_nc)

    # (NC, r*r, Ho, Wo) row-major == (N, C*r*r, Ho, Wo) row-major -> free reshape.
    return out.reshape(N, C * r * r, Ho, Wo)


if __name__ == "__main__":
    N, C, H, W, r = 2, 4, 16, 16, 2
    key = jax.random.PRNGKey(0)
    x = jax.random.normal(key, (N, C, H, W), dtype=jnp.float32)

    out = jax.block_until_ready(unpixel_shuffle(x, r))

    ref = _reference(x, r)
    assert out.shape == (N, C * r * r, H // r, W // r)
    assert bool(jnp.all(out == ref)), "Pallas output does not match reference"
    print("KERNEL_OK")
</pallas_src>

<mosaic_0001>
module attributes {stable_mosaic.version = 11 : i64} {
  func.func @_unpixel_shuffle_kernel(%arg0: i32, %arg1: memref<4x16x16xf32, #tpu.memory_space<vmem>>, %arg2: memref<4x4x8x8xf32, #tpu.memory_space<vmem>>) attributes {dimension_semantics = [#tpu.dimension_semantics<parallel>], iteration_bounds = array<i64: 2>, scalar_prefetch = 0 : i64, scratch_operands = 0 : i64, tpu.core_type = #tpu.core_type<tc>, window_params = [{transform_indices = @transform_0, window_bounds = array<i64: 4, 16, 16>}, {transform_indices = @transform_1, window_bounds = array<i64: 4, 4, 8, 8>}]} {
    %0 = tpu.iota {dimensions = array<i32: 0>} : vector<16x8xi32>
    %1 = tpu.iota {dimensions = array<i32: 1>} : vector<16x8xi32>
    %c2_i32 = arith.constant 2 : i32
    %2 = vector.broadcast %c2_i32 : i32 to vector<16x8xi32>
    %3 = arith.muli %1, %2 : vector<16x8xi32>
    %c0_i32 = arith.constant 0 : i32
    %4 = vector.broadcast %c0_i32 : i32 to vector<16x8xi32>
    %5 = arith.addi %3, %4 : vector<16x8xi32>
    %6 = arith.cmpi eq, %0, %5 : vector<16x8xi32>
    %cst = arith.constant 1.000000e+00 : f32
    %cst_0 = arith.constant 0.000000e+00 : f32
    %7 = vector.broadcast %cst : f32 to vector<16x8xf32>
    %8 = vector.broadcast %cst_0 : f32 to vector<16x8xf32>
    %9 = arith.select %6, %7, %8 : vector<16x8xi1>, vector<16x8xf32>
    %c2_i32_1 = arith.constant 2 : i32
    %10 = vector.broadcast %c2_i32_1 : i32 to vector<16x8xi32>
    %11 = arith.muli %1, %10 : vector<16x8xi32>
    %c1_i32 = arith.constant 1 : i32
    %12 = vector.broadcast %c1_i32 : i32 to vector<16x8xi32>
    %13 = arith.addi %11, %12 : vector<16x8xi32>
    %14 = arith.cmpi eq, %0, %13 : vector<16x8xi32>
    %cst_2 = arith.constant 1.000000e+00 : f32
    %cst_3 = arith.constant 0.000000e+00 : f32
    %15 = vector.broadcast %cst_2 : f32 to vector<16x8xf32>
    %16 = vector.broadcast %cst_3 : f32 to vector<16x8xf32>
    %17 = arith.select %14, %15, %16 : vector<16x8xi1>, vector<16x8xf32>
    %c0 = arith.constant 0 : index
    %c0_4 = arith.constant 0 : index
    %c0_5 = arith.constant 0 : index
    %18 = tpu.strided_load %arg1[%c0, %c0_4, %c0_5] {strides = array<i32: 1, 2, 1>} : memref<4x16x16xf32, #tpu.memory_space<vmem>>, vector<4x8x16xf32>
    %19 = vector.shape_cast %18 : vector<4x8x16xf32> to vector<32x16xf32>
    %cst_6 = arith.constant dense<0.000000e+00> : vector<32x8xf32>
    %20 = tpu.matmul %19, %9, %cst_6 {dimension_numbers = #tpu.dot_dimension_numbers<[1], [0], [0], [1], [0, 0, 1, 1], [], []>} : vector<32x16xf32>, vector<16x8xf32>, vector<32x8xf32> -> vector<32x8xf32>
    %21 = vector.shape_cast %20 : vector<32x8xf32> to vector<4x8x8xf32>
    %c0_7 = arith.constant 0 : index
    %c0_8 = arith.constant 0 : index
    %c0_9 = arith.constant 0 : index
    %c0_10 = arith.constant 0 : index
    %22 = vector.load %arg2[%c0_7, %c0_8, %c0_9, %c0_10] : memref<4x4x8x8xf32, #tpu.memory_space<vmem>>, vector<4x1x8x8xf32>
    %23 = vector.shape_cast %22 : vector<4x1x8x8xf32> to vector<4x8x8xf32>
    %24 = vector.shape_cast %21 : vector<4x8x8xf32> to vector<4x1x8x8xf32>
    tpu.vector_store %arg2[%c0_7, %c0_8, %c0_9, %c0_10], %24 {strides = array<i32>} : memref<4x4x8x8xf32, #tpu.memory_space<vmem>>, vector<4x1x8x8xf32>,
    %cst_11 = arith.constant dense<0.000000e+00> : vector<32x8xf32>
    %25 = tpu.matmul %19, %17, %cst_11 {dimension_numbers = #tpu.dot_dimension_numbers<[1], [0], [0], [1], [0, 0, 1, 1], [], []>} : vector<32x16xf32>, vector<16x8xf32>, vector<32x8xf32> -> vector<32x8xf32>
    %26 = vector.shape_cast %25 : vector<32x8xf32> to vector<4x8x8xf32>
    %c0_12 = arith.constant 0 : index
    %c1 = arith.constant 1 : index
    %c0_13 = arith.constant 0 : index
    %c0_14 = arith.constant 0 : index
    %27 = vector.load %arg2[%c0_12, %c1, %c0_13, %c0_14] : memref<4x4x8x8xf32, #tpu.memory_space<vmem>>, vector<4x1x8x8xf32>
    %28 = vector.shape_cast %27 : vector<4x1x8x8xf32> to vector<4x8x8xf32>
    %29 = vector.shape_cast %26 : vector<4x8x8xf32> to vector<4x1x8x8xf32>
    tpu.vector_store %arg2[%c0_12, %c1, %c0_13, %c0_14], %29 {strides = array<i32>} : memref<4x4x8x8xf32, #tpu.memory_space<vmem>>, vector<4x1x8x8xf32>,
    %c0_15 = arith.constant 0 : index
    %c1_16 = arith.constant 1 : index
    %c0_17 = arith.constant 0 : index
    %30 = tpu.strided_load %arg1[%c0_15, %c1_16, %c0_17] {strides = array<i32: 1, 2, 1>} : memref<4x16x16xf32, #tpu.memory_space<vmem>>, vector<4x8x16xf32>
    %31 = vector.shape_cast %30 : vector<4x8x16xf32> to vector<32x16xf32>
    %cst_18 = arith.constant dense<0.000000e+00> : vector<32x8xf32>
    %32 = tpu.matmul %31, %9, %cst_18 {dimension_numbers = #tpu.dot_dimension_numbers<[1], [0], [0], [1], [0, 0, 1, 1], [], []>} : vector<32x16xf32>, vector<16x8xf32>, vector<32x8xf32> -> vector<32x8xf32>
    %33 = vector.shape_cast %32 : vector<32x8xf32> to vector<4x8x8xf32>
    %c0_19 = arith.constant 0 : index
    %c2 = arith.constant 2 : index
    %c0_20 = arith.constant 0 : index
    %c0_21 = arith.constant 0 : index
    %34 = vector.load %arg2[%c0_19, %c2, %c0_20, %c0_21] : memref<4x4x8x8xf32, #tpu.memory_space<vmem>>, vector<4x1x8x8xf32>
    %35 = vector.shape_cast %34 : vector<4x1x8x8xf32> to vector<4x8x8xf32>
    %36 = vector.shape_cast %33 : vector<4x8x8xf32> to vector<4x1x8x8xf32>
    tpu.vector_store %arg2[%c0_19, %c2, %c0_20, %c0_21], %36 {strides = array<i32>} : memref<4x4x8x8xf32, #tpu.memory_space<vmem>>, vector<4x1x8x8xf32>,
    %cst_22 = arith.constant dense<0.000000e+00> : vector<32x8xf32>
    %37 = tpu.matmul %31, %17, %cst_22 {dimension_numbers = #tpu.dot_dimension_numbers<[1], [0], [0], [1], [0, 0, 1, 1], [], []>} : vector<32x16xf32>, vector<16x8xf32>, vector<32x8xf32> -> vector<32x8xf32>
    %38 = vector.shape_cast %37 : vector<32x8xf32> to vector<4x8x8xf32>
    %c0_23 = arith.constant 0 : index
    %c3 = arith.constant 3 : index
    %c0_24 = arith.constant 0 : index
    %c0_25 = arith.constant 0 : index
    %39 = vector.load %arg2[%c0_23, %c3, %c0_24, %c0_25] : memref<4x4x8x8xf32, #tpu.memory_space<vmem>>, vector<4x1x8x8xf32>
    %40 = vector.shape_cast %39 : vector<4x1x8x8xf32> to vector<4x8x8xf32>
    %41 = vector.shape_cast %38 : vector<4x8x8xf32> to vector<4x1x8x8xf32>
    tpu.vector_store %arg2[%c0_23, %c3, %c0_24, %c0_25], %41 {strides = array<i32>} : memref<4x4x8x8xf32, #tpu.memory_space<vmem>>, vector<4x1x8x8xf32>,
    return
  }
  func.func @transform_0(%arg0: i32) -> (i32, i32, i32) {
    %c0_i32 = arith.constant 0 : i32
    %c0_i32_0 = arith.constant 0 : i32
    %c0_i32_1 = arith.constant 0 : i32
    return %arg0, %c0_i32, %c0_i32_0 : i32, i32, i32
  }
  func.func @transform_1(%arg0: i32) -> (i32, i32, i32, i32) {
    %c0_i32 = arith.constant 0 : i32
    %c0_i32_0 = arith.constant 0 : i32
    %c0_i32_1 = arith.constant 0 : i32
    %c0_i32_2 = arith.constant 0 : i32
    return %arg0, %c0_i32, %c0_i32_0, %c0_i32_1 : i32, i32, i32, i32
  }
}

</mosaic_0001>

<bundles_post_ra>
// kernel: tpu_custom_call.1
= control target key start
LH: loop header
LB: loop body
LE: loop exit
PB: predicated region body
PF: predicated region fallthrough
CT: control target
= control target key end

     0   :  { %6 = vsyncpa [#allocation3], 0  ;;  %s1186_s0 = inlined_call_operand.hbm [shape: f32[8,16,16], index: 0, kind: input, shape index: {}]   ;;  %s1187_s1 = inlined_call_operand.hbm [shape: f32[8,4,8,8], index: 1, kind: output, shape index: {}]  }
   0x1   :  { %8 = vsyncpa [#allocation3 + $0x1], 0 }
   0x2   :  { %9 = vsyncpa [#allocation4], 0 }
   0x3   :  { %11 = vsyncpa [#allocation4 + $0x1], 0  ;;  %s950_s6 = smov 0   ;;  %s952_s7 = smov 0  }
   0x4   :  { %s954_s8 = smov 0   ;;  %s956_s9 = smov 0  }
   0x5 LB: > { %s971_s10 = sadd.s32 4294967295, %s931_s9   ;;  %s641_s11 = sadd.s32 4294967294, %s931_s9   ;;  %s931_s9 = sphi %s956_s9, %s1202_s9   ;;  %s927_s8 = sphi %s954_s8, %s1201_s8   ;;  %s923_s7 = sphi %s952_s7, %s1200_s7   ;;  %s919_s6 = sphi %s950_s6, %s1199_s6  }
   0x6   : > { %s975_s12 = sadd.s32 1, %s931_s9   ;;  %s24_s13 = sadd.s32 1, %s927_s8 }
   0x7   : > { %s21_s14 = ssub.s32 %s931_s9, %s975_s12  ;;  %p31_p0 = scmp.ne.s32.totalorder %s927_s8, %s923_s7 }
   0x8   : > { %p22_p1 = scmp.eq.s32.totalorder %s21_s14, 0  ;;  %p32_p2 = scmp.eq.s32.totalorder %s931_s9, 0 }
   0x9   : > { %p37_p3 = scmp.ne.s32.totalorder %s923_s7, %s919_s6  ;;  %p38_p4 = scmp.eq.s32.totalorder %s971_s10, 0 }
   0xa   : > { %s987_s15 = scalar_select %p22_p1, %s927_s8, %s24_s13  }
   0xb   : > { %p989_p5 = por %p32_p2, %p31_p0  ;;  %p993_p6 = por %p38_p4, %p37_p3 }
   0xc   : > { %p61_p7 = scmp.eq.s32.totalorder %s971_s10, 1  ;;  %p67_p8 = scmp.eq.s32.totalorder %s641_s11, 1 }
   0xd   : > { %p796_p10 = scmp.lt.s32.totalorder %s931_s9, 2  ;;  %s87_s20 = sand.u32 1, %s927_s8  }
   0xe   : > { %p1000_p11 = por %p61_p7, %p31_p0  ;;  %p1004_p12 = por %p67_p8, %p37_p3 }
   0xf   : > { %s701_s21 = sshll.u32 %s931_s9, 10  ;;  %s644_s22 = sshll.u32 %s87_s20, 6 }
  0x10   : > { %s1191_s18 = scalar_select %p1000_p11, 1, 0 }
  0x11   : > { %s1192_s19 = scalar_select %p1004_p12, 1, 0 }
  0x12   : > { %s1013_s25 = scalar_lea.hbm %s1186_s0, %s701_s21  ;;  %s91_s26 = scalar_lea.vmem [#allocation2], %s644_s22 }
  0x13   : > { %s99_s27 = sshll.u32 %s91_s26, 4  ;;  %p1017_p13 = pnand %p796_p10, %p989_p5  ;;  %s1021_s27 = int_to_ptr.vmem [resolvable:$true] %s99_s27 }
  0x14   : > { %s1023_s29 = scalar_lea.sflag [#allocation3], %s87_s20  ;;  %s835_s30 = scalar_lea.hbm %s1013_s25, 1024 }
  0x15   : > { %p836_p0 = scmp.ne.s32.totalorder %s1013_s25, %s835_s30  ;;  %p837_p1 = pneg %p1017_p13 }
  0x16   : > { %s840_s4 = scalar_lea.hbm %s1186_s0, 2048  ;;  %p841_p4 = scmp.lt.u32.totalorder %s1013_s25, %s1186_s0 }
  0x17   : > { %p838_p2 = pnand %p837_p1, %p836_p0  ;;  %p842_p5 = scmp.lt.u32.totalorder %s840_s4, %s835_s30 }
  0x18   : > { %p844_p8 = scmp.lt.u32.totalorder %s835_s30, %s1013_s25 }
  0x19   : > { %p839_p3 = pneg %p838_p2  ;;  %p843_p7 = por %p842_p5, %p841_p4 }
  0x1b   : > { %p845_p10 = por %p844_p8, %p843_p7 }
  0x1d   : > { %p846_p9 = pnand %p845_p10, %p839_p3 }
  0x1f   : > { %849 = shalt.err (!%p846_p9)
}
  0x20   : > { %s850_s13 = scalar_lea.vmem %s1021_s27, 1024  ;;  %s933_s14 = smov [#allocation2]  }
  0x21   : > { %p851_p0 = scmp.ne.s32.totalorder %s1021_s27, %s850_s13  ;;  %s855_s16 = sshll.u32 %s933_s14, 4  ;;  %s856_s16 = int_to_ptr.vmem [resolvable:$false] %s855_s16 }
  0x22   : > { %s857_s20 = scalar_lea.vmem %s856_s16, 2048  ;;  %p858_p11 = scmp.lt.s32.totalorder %s1021_s27, %s856_s16 }
  0x23   : > { %p853_p2 = pnand %p851_p0, %p837_p1  ;;  %p859_p4 = scmp.lt.s32.totalorder %s857_s20, %s850_s13 }
  0x25   : > { %p854_p12 = pneg %p853_p2  ;;  %p860_p5 = por %p859_p4, %p858_p11 }
  0x27   : > { %p861_p7 = pnand %p860_p5, %p854_p12 }
  0x29   : > { %864 = shalt.err (!%p861_p7)
}
  0x2a   : > { %s934_s21 = smov 128   ;;  %s935_s22 = smov 8  }
  0x2b   : > { %791 = dma.hbm_to_vmem [thread:$0]  (!%p1017_p13), %s1013_s25, 1024, %s1021_s27, %s1023_s29, %s934_s21, %s934_s21, %s935_s22  }
  0x2c   : > { %p648_p9 = scmp.ge.s32.totalorder %s931_s9, 1  ;;  %p107_p1 = scmp.lt.s32.totalorder %s931_s9, 3 }
  0x2e   : > { %p108_p3 = pnand %p648_p9, %p107_p1 }
  0x2f   : > { %s1054_s23 = sand.u32 (!%p108_p3), 1, %s923_s7  }
  0x30   : > { %111 = sbr.rel (%p108_p3) target bundleno = 310 (0x136), region = 24  ;;  %s649_s24 = sshll.u32 (!%p108_p3), %s1054_s23, 6 }
  0x31   : > { %s114_s26 = scalar_lea.sflag (!%p108_p3), [#allocation3], %s1054_s23  ;;  %s1058_s30 = scalar_lea.vmem (!%p108_p3), [#allocation2], %s649_s24 }
  0x37   : > { %910 = dma.done.wait (%p993_p6), %s114_s26, 1024  }
  0x38   : > { %912 = vsyncadd (%p993_p6), %s114_s26, 4294966272  ;;  %v138_v0 = vlaneseq  ;;  %vm160_vm0 = vcmask 130048   ;;  %v153_v7 = vld [vmem:[%s1058_s30] ss:$2 sm:$0xff]  ;;  %v936_v8 = vmov 1.0|1.0  }
  0x39   : > { %732 = vmatprep.mubr.msk.f32.mxu0 %vm160_vm0, %v153_v7  ;;  %742 = vmatprep.mubr.msk.f32.mxu1 %vm160_vm0, %v153_v7  ;;  %v651_v9 = vld [vmem:[%s1058_s30 + $0x10] ss:$2 sm:$0xff]  ;;  %v652_v10 = vld [vmem:[%s1058_s30 + $0x20] ss:$2 sm:$0xff]  ;;  %v670_v12 = vld [vmem:[%s1058_s30 + $0x1] ss:$2 sm:$0xff] }
  0x3a   : > { %v139_v1 = vshrl.u32 %v138_v0, 7  ;;  %v142_v2 = vand.u32 127, %v138_v0  ;;  %v653_v11 = vld [vmem:[%s1058_s30 + $0x30] ss:$2 sm:$0xff]  ;;  %v671_v13 = vld [vmem:[%s1058_s30 + $0x11] ss:$2 sm:$0xff] }
  0x3b   : > { %v672_v14 = vld [vmem:[%s1058_s30 + $0x21] ss:$2 sm:$0xff]  ;;  %v673_v15 = vld [vmem:[%s1058_s30 + $0x31] ss:$2 sm:$0xff]  ;;  %s650_s17 = sshll.u32 %s1054_s23, 7  ;;  %vm258_vm7 = vcmask 64512  }
  0x3c   : > { %v140_v3 = vadd.s32 8, %v139_v1  ;;  %v143_v4 = vmul.u32 2, %v142_v2  ;;  %s1101_s25 = scalar_lea.vmem [#allocation5], %s650_s17  ;;  %s703_s27 = sshll.u32 %s971_s10, 11 }
  0x3d   : > { %s568_s28 = sshll.u32 %s1101_s25, 4  ;;  %s1134_s3 = scalar_lea.hbm %s1187_s1, %s703_s27  ;;  %s1136_s28 = int_to_ptr.vmem [resolvable:$true] %s568_s28 }
  0x3e   : > { %vm144_vm1 = vcmp.eq.s32.totalorder %v139_v1, %v143_v4  ;;  %vm145_vm2 = vcmp.eq.s32.totalorder %v140_v3, %v143_v4  ;;  %v148_v5 = vadd.s32 1, %v143_v4  ;;  %s554_s10 = scalar_lea.sflag [#allocation4], %s1054_s23  ;;  %s865_s4 = scalar_lea.vmem %s1136_s28, 2048 }
  0x3f   : > { %vm1064_vm3 = vmpackc.low %vm145_vm2, %vm144_vm1  ;;  %p866_p6 = scmp.ne.s32.totalorder %s1136_s28, %s865_s4  ;;  %p1196_p11 = scmp.ne.s32.totalorder %s1191_s18, 0 }
  0x40   : > { %769 = vmatprep.subr.msk.bf16.mxu0 %vm1064_vm3, %v936_v8  ;;  %vm149_vm4 = vcmp.eq.s32.totalorder %v139_v1, %v148_v5  ;;  %vm150_vm5 = vcmp.eq.s32.totalorder %v140_v3, %v148_v5  ;;  %s937_s5 = smov [#allocation5]  }
  0x41   : > { %vm772_vm6 = vmpackc.low %vm150_vm5, %vm149_vm4  ;;  %771 = vmatpush3.bf16.msk.msra.mxu0 %vm1064_vm3, %v936_v8  ;;  %p867_p12 = pnand %p866_p6, %p1196_p11  ;;  %s869_s11 = sshll.u32 %s937_s5, 4  ;;  %s870_s11 = int_to_ptr.vmem [resolvable:$false] %s869_s11 }
  0x42   : > { %773 = vmatprep.subr.msk.bf16.mxu1 %vm772_vm6, %v936_v8  ;;  %777 = vmatprep.subr.msk.bf16.mxu0 %vm1064_vm3, %v936_v8  ;;  %s871_s13 = scalar_lea.vmem %s870_s11, 4096  ;;  %p872_p8 = scmp.lt.s32.totalorder %s1136_s28, %s870_s11 }
  0x43   : > { %775 = vmatpush3.bf16.msk.msra.mxu1 %vm772_vm6, %v936_v8  ;;  %p868_p13 = pneg %p867_p12  ;;  %p873_p10 = scmp.lt.s32.totalorder %s871_s13, %s865_s4 }
  0x44   : > { %733 = vmatmul.mubr.msk.f32.vlgmr.msra.gmra.mrb[0].mxu0 %vm160_vm0, %v651_v9  ;;  %781 = vmatprep.subr.msk.bf16.mxu1 %vm772_vm6, %v936_v8 }
  0x45   : > { %779 = vmatpush3.bf16.msk.msra.mxu0 %vm1064_vm3, %v936_v8  ;;  %735 = vmatprep.mubr.msk.f32.mxu0 %vm160_vm0, %v652_v10  ;;  %p874_p0 = por %p873_p10, %p872_p8 }
  0x46   : > { %743 = vmatmul.mubr.msk.f32.vlgmr.msra.gmra.mrb[0].mxu1 %vm160_vm0, %v651_v9 }
  0x47   : > { %783 = vmatpush3.bf16.msk.msra.mxu1 %vm772_vm6, %v936_v8  ;;  %745 = vmatprep.mubr.msk.f32.mxu1 %vm160_vm0, %v652_v10  ;;  %p875_p2 = pnand %p874_p0, %p868_p13 }
  0x48   : > { %736 = vmatmul.mubr.msk.f32.gmra.mrb[2].mxu0 %vm160_vm0, %v653_v11 }
  0x49   : > { %752 = vmatprep.mubr.msk.f32.mxu0 %vm160_vm0, %v670_v12 }
  0x4a   : > { %746 = vmatmul.mubr.msk.f32.gmra.mrb[2].mxu1 %vm160_vm0, %v653_v11 }
  0x4b   : > { %762 = vmatprep.mubr.msk.f32.mxu1 %vm160_vm0, %v670_v12 }
  0x4c   : > { %753 = vmatmul.mubr.msk.f32.vlgmr.msra.gmra.mrb[4].mxu0 %vm160_vm0, %v671_v13 }
  0x4d   : > { %755 = vmatprep.mubr.msk.f32.mxu0 %vm160_vm0, %v672_v14 }
  0x4e   : > { %763 = vmatmul.mubr.msk.f32.vlgmr.msra.gmra.mrb[4].mxu1 %vm160_vm0, %v671_v13 }
  0x4f   : > { %765 = vmatprep.mubr.msk.f32.mxu1 %vm160_vm0, %v672_v14 }
  0x50   : > { %756 = vmatmul.mubr.msk.f32.gmra.mrb[6].mxu0 %vm160_vm0, %v673_v15 }
  0x52   : > { %766 = vmatmul.mubr.msk.f32.gmra.mrb[6].mxu1 %vm160_vm0, %v673_v15 }
 0x117   : > { %v734_v16 = vpop.f32.mrb[0].mxu0 }
 0x118   : > { %260 = vst.msk [vmem:[%s1101_s25 + $0x20] sm:$0xff] %vm258_vm7, %v734_v16  ;;  %v239_v17 = vpop.f32.mrb[1].mxu0 }
 0x119   : > { %v744_v18 = vpop.f32.mrb[0].mxu1  ;;  %259 = vst.msk [vmem:[%s1101_s25] sm:$0xff] %vm258_vm7, %v239_v17 }
 0x11a   : > { %667 = vst.msk [vmem:[%s1101_s25 + $0x28] sm:$0xff] %vm258_vm7, %v744_v18  ;;  %v329_v19 = vpop.f32.mrb[1].mxu1 }
 0x11b   : > { %666 = vst.msk [vmem:[%s1101_s25 + $0x8] sm:$0xff] %vm258_vm7, %v329_v19  ;;  %v737_v20 = vpop.f32.mrb[2].mxu0 }
 0x11c   : > { %262 = vst.msk [vmem:[%s1101_s25 + $0x60] sm:$0xff] %vm258_vm7, %v737_v20  ;;  %v249_v21 = vpop.f32.mrb[3].mxu0 }
 0x11d   : > { %v747_v22 = vpop.f32.mrb[2].mxu1  ;;  %261 = vst.msk [vmem:[%s1101_s25 + $0x40] sm:$0xff] %vm258_vm7, %v249_v21 }
 0x11e   : > { %669 = vst.msk [vmem:[%s1101_s25 + $0x68] sm:$0xff] %vm258_vm7, %v747_v22  ;;  %v339_v23 = vpop.f32.mrb[3].mxu1 }
 0x11f   : > { %668 = vst.msk [vmem:[%s1101_s25 + $0x48] sm:$0xff] %vm258_vm7, %v339_v23  ;;  %v754_v24 = vpop.f32.mrb[4].mxu0 }
 0x120   : > { %681 = vst.msk [vmem:[%s1101_s25 + $0x30] sm:$0xff] %vm258_vm7, %v754_v24  ;;  %v439_v25 = vpop.f32.mrb[5].mxu0 }
 0x121   : > { %v764_v26 = vpop.f32.mrb[4].mxu1  ;;  %680 = vst.msk [vmem:[%s1101_s25 + $0x10] sm:$0xff] %vm258_vm7, %v439_v25 }
 0x122   : > { %691 = vst.msk [vmem:[%s1101_s25 + $0x38] sm:$0xff] %vm258_vm7, %v764_v26  ;;  %v529_v27 = vpop.f32.mrb[5].mxu1 }
 0x123   : > { %690 = vst.msk [vmem:[%s1101_s25 + $0x18] sm:$0xff] %vm258_vm7, %v529_v27  ;;  %v757_v28 = vpop.f32.mrb[6].mxu0 }
 0x124   : > { %683 = vst.msk [vmem:[%s1101_s25 + $0x70] sm:$0xff] %vm258_vm7, %v757_v28  ;;  %v449_v29 = vpop.f32.mrb[7].mxu0 }
 0x125   : > { %v767_v30 = vpop.f32.mrb[6].mxu1  ;;  %682 = vst.msk [vmem:[%s1101_s25 + $0x50] sm:$0xff] %vm258_vm7, %v449_v29 }
 0x126   : > { %693 = vst.msk [vmem:[%s1101_s25 + $0x78] sm:$0xff] %vm258_vm7, %v767_v30  ;;  %v539_v31 = vpop.f32.mrb[7].mxu1 }
 0x127   : > { %692 = vst.msk [vmem:[%s1101_s25 + $0x58] sm:$0xff] %vm258_vm7, %v539_v31 }
 0x128   : > { %878 = shalt.err (!%p875_p2)
}
 0x129   : > { %s879_s14 = scalar_lea.hbm %s1134_s3, 2048  ;;  %s883_s21 = scalar_lea.hbm %s1187_s1, 4096 }
 0x12a   : > { %p880_p4 = scmp.ne.s32.totalorder %s1134_s3, %s879_s14  ;;  %p884_p9 = scmp.lt.u32.totalorder %s1134_s3, %s1187_s1 }
 0x12b   : > { %p885_p1 = scmp.lt.u32.totalorder %s883_s21, %s879_s14  ;;  %p887_p6 = scmp.lt.u32.totalorder %s879_s14, %s1134_s3 }
 0x12c   : > { %p881_p5 = pnand %p880_p4, %p1196_p11 }
 0x12d   : > { %p886_p3 = por %p885_p1, %p884_p9 }
 0x12e   : > { %p882_p7 = pneg %p881_p5 }
 0x12f   : > { %p888_p12 = por %p887_p6, %p886_p3 }
 0x131   : > { %p889_p13 = pnand %p888_p12, %p882_p7 }
 0x133   : > { %892 = shalt.err (!%p889_p13)
}
 0x134   : > { %s938_s26 = smov 128   ;;  %s939_s30 = smov 8  }
 0x135   : > { %786 = dma.vmem_to_hbm [thread:$0]  (%p1196_p11), %s1136_s28, 2048, %s1134_s3, %s554_s10, %s938_s26, %s938_s26, %s939_s30  }
 0x136 PF: > { %s583_s17 = sand.u32 1, %s919_s6   ;;  %p1197_p8 = scmp.ne.s32.totalorder %s1192_s19, 0 }
 0x137   : > { %p1198_p10 = scmp.ge.s32.totalorder %s931_s9, 2  ;;  %s584_s25 = scalar_lea.sflag [#allocation4], %s583_s17 }
 0x139   : > { %p793_p0 = pnand %p1198_p10, %p1197_p8 }
 0x13b   : > { %914 = dma.done.wait (!%p793_p0), %s584_s25, 2048  }
 0x13c   : > { %916 = vsyncadd (!%p793_p0), %s584_s25, 4294965248  ;;  %p14_p2 = scmp.ge.s32.totalorder %s975_s12, 4   ;;  %s1199_s6 = smov %s923_s7 }
 0x13d   : > { %s1200_s7 = smov %s927_s8  ;;  %s1201_s8 = smov %s987_s15 }
 0x13e   : > { %s1202_s9 = smov %s975_s12  ;;  %16 = sbr.rel (!%p14_p2) target bundleno = 5 (0x5), region = 79 }
 0x145   :  { %589 = vsyncpa [#allocation3], 1 }
 0x146   :  { %591 = vsyncpa [#allocation3 + $0x1], 1 }
 0x147   :  { %592 = vsyncpa [#allocation4], 1 }
 0x148   :  { %594 = vsyncpa [#allocation4 + $0x1], 1 }

</bundles_post_ra>
